<compile_context>
chip_gen: v7x
topology: tpu7x:2x2x1
jax: 0.10.0
libtpu: 0.0.40
codegen_flags: <defaults>
</compile_context>

<pallas_src>
import functools

import numpy as np
import jax
import jax.numpy as jnp
from jax.experimental import pallas as pl
from jax.experimental.pallas import tpu as pltpu


def mha_kernel(x_ref, wqkv_ref, bqkv_ref, wo_ref, bo_ref, o_ref, *, num_heads):
    S, E = x_ref.shape[1], x_ref.shape[2]
    Dh = E // num_heads
    scale = 1.0 / np.sqrt(float(Dh))

    x = x_ref[0].astype(jnp.bfloat16)          # (S, E)  bf16 MXU operand
    wqkv = wqkv_ref[...]                        # (E, 3E) bf16, VMEM-resident
    bqkv = bqkv_ref[...]                        # (1, 3E) f32

    # Fused QKV projection: one wide MXU matmul, f32 accumulation.
    qkv = jnp.dot(x, wqkv, preferred_element_type=jnp.float32) + bqkv   # (S, 3E)

    q = qkv[:, 0:E] * scale                     # fold 1/sqrt(Dh) into q
    k = qkv[:, E:2 * E]
    v = qkv[:, 2 * E:3 * E]

    q_bf = q.astype(jnp.bfloat16)
    k_bf = k.astype(jnp.bfloat16)
    v_bf = v.astype(jnp.bfloat16)

    head_outs = []
    for h in range(num_heads):                  # static unroll over heads
        sl = slice(h * Dh, (h + 1) * Dh)
        qh, kh, vh = q_bf[:, sl], k_bf[:, sl], v_bf[:, sl]

        # Q @ K^T without an explicit transpose of K (contract on dim 1 of both).
        scores = jax.lax.dot_general(
            qh, kh, (((1,), (1,)), ((), ())),
            preferred_element_type=jnp.float32)            # (S, S) f32

        # Numerically-stable softmax; elementwise math stays f32 (v5e VPU/EUP).
        m = jnp.max(scores, axis=-1, keepdims=True)
        e = jnp.exp(scores - m)                             # (S, S) f32
        l = jnp.sum(e, axis=-1, keepdims=True)              # (S, 1)

        # Defer normalization: P @ V first, then one (S,1) EUP reciprocal.
        pv = jnp.dot(e.astype(jnp.bfloat16), vh,
                     preferred_element_type=jnp.float32)    # (S, Dh)
        head_outs.append(pv * pl.reciprocal(l, approx=True))

    concat = jnp.concatenate(head_outs, axis=-1)            # (S, E) f32

    # Single full-width output projection + bias, one lane-dense store.
    out = jnp.dot(concat.astype(jnp.bfloat16), wo_ref[...],
                  preferred_element_type=jnp.float32) + bo_ref[...]
    o_ref[0] = out.astype(o_ref.dtype)


def multi_head_attention(x, params):
    """x: (B, S, E) float32. params: per-head weights in math form (x @ W + b)."""
    B, S, E = x.shape
    H, _, Dh = params["wq"].shape

    # Pack per-head (H, E, Dh) projections head-major into (E, H*Dh), then fuse
    # Q|K|V along the output dim -> (E, 3E).  Biases likewise -> (1, 3E).
    def cols(w):
        return jnp.transpose(w, (1, 0, 2)).reshape(E, H * Dh)

    w_qkv = jnp.concatenate(
        [cols(params["wq"]), cols(params["wk"]), cols(params["wv"])],
        axis=1).astype(jnp.bfloat16)                             # (E, 3E)
    b_qkv = jnp.concatenate(
        [params["bq"].reshape(-1), params["bk"].reshape(-1),
         params["bv"].reshape(-1)]).reshape(1, 3 * E).astype(jnp.float32)
    w_o = params["wo"].astype(jnp.bfloat16)                      # (E, E)
    b_o = params["bo"].reshape(1, E).astype(jnp.float32)

    kernel = functools.partial(mha_kernel, num_heads=H)

    return pl.pallas_call(
        kernel,
        out_shape=jax.ShapeDtypeStruct((B, S, E), jnp.float32),
        grid_spec=pltpu.PrefetchScalarGridSpec(
            num_scalar_prefetch=0,
            grid=(B,),
            in_specs=[
                pl.BlockSpec((1, S, E), lambda b: (b, 0, 0)),     # x (per batch)
                pl.BlockSpec((E, 3 * E), lambda b: (0, 0)),       # W_qkv (resident)
                pl.BlockSpec((1, 3 * E), lambda b: (0, 0)),       # b_qkv (resident)
                pl.BlockSpec((E, E), lambda b: (0, 0)),           # W_O   (resident)
                pl.BlockSpec((1, E), lambda b: (0, 0)),           # b_O   (resident)
            ],
            out_specs=pl.BlockSpec((1, S, E), lambda b: (b, 0, 0)),
        ),
        compiler_params=pltpu.CompilerParams(
            dimension_semantics=("parallel",),
            vmem_limit_bytes=32 * 1024 * 1024,
        ),
    )(x, w_qkv, b_qkv, w_o, b_o)


def init_params(key, embed_dim, num_heads):
    """Deterministic synthetic parameters, math form of the PyTorch module."""
    head_dim = embed_dim // num_heads
    keys = jax.random.split(key, 8)
    scale = 0.02

    # per-head projections stored as (E, Dh) so the forward is x @ W + b
    # (i.e. already the transpose of torch's (out, in) Linear weight).
    wq = scale * jax.random.normal(keys[0], (num_heads, embed_dim, head_dim), jnp.float32)
    wk = scale * jax.random.normal(keys[1], (num_heads, embed_dim, head_dim), jnp.float32)
    wv = scale * jax.random.normal(keys[2], (num_heads, embed_dim, head_dim), jnp.float32)
    bq = scale * jax.random.normal(keys[3], (num_heads, head_dim), jnp.float32)
    bk = scale * jax.random.normal(keys[4], (num_heads, head_dim), jnp.float32)
    bv = scale * jax.random.normal(keys[5], (num_heads, head_dim), jnp.float32)

    # output_linear in math form: concat(heads) @ wo + bo, wo shape (E, E).
    wo = scale * jax.random.normal(keys[6], (embed_dim, embed_dim), jnp.float32)
    bo = scale * jax.random.normal(keys[7], (embed_dim,), jnp.float32)

    return dict(wq=wq, wk=wk, wv=wv, bq=bq, bk=bk, bv=bv, wo=wo, bo=bo)


def reference_mha(x, params):
    """Pure-JAX f32 reference reproducing the PyTorch forward semantics."""
    H, _, Dh = params["wq"].shape
    heads = []
    for h in range(H):
        q = x @ params["wq"][h] + params["bq"][h]
        k = x @ params["wk"][h] + params["bk"][h]
        v = x @ params["wv"][h] + params["bv"][h]
        scores = jnp.einsum("bsd,btd->bst", q, k) / np.sqrt(float(Dh))
        w = jax.nn.softmax(scores, axis=-1)
        heads.append(jnp.einsum("bst,btd->bsd", w, v))
    concat = jnp.concatenate(heads, axis=-1)
    return concat @ params["wo"] + params["bo"]


if __name__ == "__main__":
    B, S, E, H = 2, 8, 32, 4   # batch=2, seq=8, embed_dim=32, num_heads=4 -> head_dim=8

    key = jax.random.PRNGKey(0)
    k_x, k_p = jax.random.split(key)
    x = jax.random.normal(k_x, (B, S, E), jnp.float32)
    params = init_params(k_p, E, H)

    out = multi_head_attention(x, params)
    out = jax.block_until_ready(out)

    ref = reference_mha(x, params)
    # bf16 MXU operands + approx EUP reciprocal -> relaxed tolerances vs f32 ref.
    np.testing.assert_allclose(np.asarray(out), np.asarray(ref), rtol=2e-2, atol=5e-3)

    print("KERNEL_OK")
</pallas_src>

<mosaic_0001>
module attributes {stable_mosaic.version = 11 : i64} {
  func.func @mha_kernel(%arg0: i32, %arg1: memref<1x8x32xf32, #tpu.memory_space<vmem>>, %arg2: memref<32x96xbf16, #tpu.memory_space<vmem>>, %arg3: memref<1x96xf32, #tpu.memory_space<vmem>>, %arg4: memref<32x32xbf16, #tpu.memory_space<vmem>>, %arg5: memref<1x32xf32, #tpu.memory_space<vmem>>, %arg6: memref<1x8x32xf32, #tpu.memory_space<vmem>>) attributes {dimension_semantics = [#tpu.dimension_semantics<parallel>], iteration_bounds = array<i64: 2>, scalar_prefetch = 0 : i64, scratch_operands = 0 : i64, tpu.core_type = #tpu.core_type<tc>, window_params = [{transform_indices = @transform_0, window_bounds = array<i64: 1, 8, 32>}, {pipeline_mode = #tpu.pipeline_mode<synchronous>, transform_indices = @transform_1, window_bounds = array<i64: 32, 96>}, {pipeline_mode = #tpu.pipeline_mode<synchronous>, transform_indices = @transform_2, window_bounds = array<i64: 1, 96>}, {pipeline_mode = #tpu.pipeline_mode<synchronous>, transform_indices = @transform_3, window_bounds = array<i64: 32, 32>}, {pipeline_mode = #tpu.pipeline_mode<synchronous>, transform_indices = @transform_4, window_bounds = array<i64: 1, 32>}, {transform_indices = @transform_5, window_bounds = array<i64: 1, 8, 32>}]} {
    %c0 = arith.constant 0 : index
    %c0_0 = arith.constant 0 : index
    %c0_1 = arith.constant 0 : index
    %0 = vector.load %arg1[%c0, %c0_0, %c0_1] : memref<1x8x32xf32, #tpu.memory_space<vmem>>, vector<1x8x32xf32>
    %1 = vector.shape_cast %0 : vector<1x8x32xf32> to vector<8x32xf32>
    %2 = arith.truncf %1 : vector<8x32xf32> to vector<8x32xbf16>
    %c0_2 = arith.constant 0 : index
    %c0_3 = arith.constant 0 : index
    %3 = vector.load %arg2[%c0_2, %c0_3] : memref<32x96xbf16, #tpu.memory_space<vmem>>, vector<32x96xbf16>
    %c0_4 = arith.constant 0 : index
    %c0_5 = arith.constant 0 : index
    %4 = vector.load %arg3[%c0_4, %c0_5] : memref<1x96xf32, #tpu.memory_space<vmem>>, vector<1x96xf32>
    %cst = arith.constant dense<0.000000e+00> : vector<8x96xf32>
    %5 = tpu.matmul %2, %3, %cst {dimension_numbers = #tpu.dot_dimension_numbers<[1], [0], [0], [1], [0, 0, 1, 1], [], []>} : vector<8x32xbf16>, vector<32x96xbf16>, vector<8x96xf32> -> vector<8x96xf32>
    %6 = vector.broadcast %4 : vector<1x96xf32> to vector<8x96xf32>
    %7 = arith.addf %5, %6 : vector<8x96xf32>
    %8 = vector.extract_strided_slice %7 {offsets = [0, 0], sizes = [8, 32], strides = [1, 1]} : vector<8x96xf32> to vector<8x32xf32>
    %cst_6 = arith.constant 0.353553385 : f32
    %9 = vector.broadcast %cst_6 : f32 to vector<8x32xf32>
    %10 = arith.mulf %8, %9 : vector<8x32xf32>
    %11 = vector.extract_strided_slice %7 {offsets = [0, 32], sizes = [8, 32], strides = [1, 1]} : vector<8x96xf32> to vector<8x32xf32>
    %12 = vector.extract_strided_slice %7 {offsets = [0, 64], sizes = [8, 32], strides = [1, 1]} : vector<8x96xf32> to vector<8x32xf32>
    %13 = arith.truncf %10 : vector<8x32xf32> to vector<8x32xbf16>
    %14 = arith.truncf %11 : vector<8x32xf32> to vector<8x32xbf16>
    %15 = arith.truncf %12 : vector<8x32xf32> to vector<8x32xbf16>
    %16 = vector.extract_strided_slice %13 {offsets = [0, 0], sizes = [8, 8], strides = [1, 1]} : vector<8x32xbf16> to vector<8x8xbf16>
    %17 = vector.extract_strided_slice %14 {offsets = [0, 0], sizes = [8, 8], strides = [1, 1]} : vector<8x32xbf16> to vector<8x8xbf16>
    %18 = vector.extract_strided_slice %15 {offsets = [0, 0], sizes = [8, 8], strides = [1, 1]} : vector<8x32xbf16> to vector<8x8xbf16>
    %cst_7 = arith.constant dense<0.000000e+00> : vector<8x8xf32>
    %19 = tpu.matmul %16, %17, %cst_7 {dimension_numbers = #tpu.dot_dimension_numbers<[1], [1], [0], [0], [0, 0, 1, 0], [], []>} : vector<8x8xbf16>, vector<8x8xbf16>, vector<8x8xf32> -> vector<8x8xf32>
    %cst_8 = arith.constant dense<0xFF800000> : vector<8xf32>
    %20 = vector.multi_reduction <maximumf>, %19, %cst_8 [1] : vector<8x8xf32> to vector<8xf32>
    %21 = vector.shape_cast %20 : vector<8xf32> to vector<8x1xf32>
    %22 = vector.broadcast %21 : vector<8x1xf32> to vector<8x8xf32>
    %23 = arith.subf %19, %22 : vector<8x8xf32>
    %24 = math.exp %23 : vector<8x8xf32>
    %cst_9 = arith.constant dense<0.000000e+00> : vector<8xf32>
    %25 = vector.multi_reduction <add>, %24, %cst_9 [1] : vector<8x8xf32> to vector<8xf32>
    %26 = vector.shape_cast %25 : vector<8xf32> to vector<8x1xf32>
    %27 = arith.truncf %24 : vector<8x8xf32> to vector<8x8xbf16>
    %cst_10 = arith.constant dense<0.000000e+00> : vector<8x8xf32>
    %28 = tpu.matmul %27, %18, %cst_10 {dimension_numbers = #tpu.dot_dimension_numbers<[1], [0], [0], [1], [0, 0, 1, 1], [], []>} : vector<8x8xbf16>, vector<8x8xbf16>, vector<8x8xf32> -> vector<8x8xf32>
    %29 = tpu.reciprocal %26 {approx = true} : vector<8x1xf32> -> vector<8x1xf32>
    %30 = vector.broadcast %29 : vector<8x1xf32> to vector<8x8xf32>
    %31 = arith.mulf %28, %30 : vector<8x8xf32>
    %32 = vector.extract_strided_slice %13 {offsets = [0, 8], sizes = [8, 8], strides = [1, 1]} : vector<8x32xbf16> to vector<8x8xbf16>
    %33 = vector.extract_strided_slice %14 {offsets = [0, 8], sizes = [8, 8], strides = [1, 1]} : vector<8x32xbf16> to vector<8x8xbf16>
    %34 = vector.extract_strided_slice %15 {offsets = [0, 8], sizes = [8, 8], strides = [1, 1]} : vector<8x32xbf16> to vector<8x8xbf16>
    %cst_11 = arith.constant dense<0.000000e+00> : vector<8x8xf32>
    %35 = tpu.matmul %32, %33, %cst_11 {dimension_numbers = #tpu.dot_dimension_numbers<[1], [1], [0], [0], [0, 0, 1, 0], [], []>} : vector<8x8xbf16>, vector<8x8xbf16>, vector<8x8xf32> -> vector<8x8xf32>
    %cst_12 = arith.constant dense<0xFF800000> : vector<8xf32>
    %36 = vector.multi_reduction <maximumf>, %35, %cst_12 [1] : vector<8x8xf32> to vector<8xf32>
    %37 = vector.shape_cast %36 : vector<8xf32> to vector<8x1xf32>
    %38 = vector.broadcast %37 : vector<8x1xf32> to vector<8x8xf32>
    %39 = arith.subf %35, %38 : vector<8x8xf32>
    %40 = math.exp %39 : vector<8x8xf32>
    %cst_13 = arith.constant dense<0.000000e+00> : vector<8xf32>
    %41 = vector.multi_reduction <add>, %40, %cst_13 [1] : vector<8x8xf32> to vector<8xf32>
    %42 = vector.shape_cast %41 : vector<8xf32> to vector<8x1xf32>
    %43 = arith.truncf %40 : vector<8x8xf32> to vector<8x8xbf16>
    %cst_14 = arith.constant dense<0.000000e+00> : vector<8x8xf32>
    %44 = tpu.matmul %43, %34, %cst_14 {dimension_numbers = #tpu.dot_dimension_numbers<[1], [0], [0], [1], [0, 0, 1, 1], [], []>} : vector<8x8xbf16>, vector<8x8xbf16>, vector<8x8xf32> -> vector<8x8xf32>
    %45 = tpu.reciprocal %42 {approx = true} : vector<8x1xf32> -> vector<8x1xf32>
    %46 = vector.broadcast %45 : vector<8x1xf32> to vector<8x8xf32>
    %47 = arith.mulf %44, %46 : vector<8x8xf32>
    %48 = vector.extract_strided_slice %13 {offsets = [0, 16], sizes = [8, 8], strides = [1, 1]} : vector<8x32xbf16> to vector<8x8xbf16>
    %49 = vector.extract_strided_slice %14 {offsets = [0, 16], sizes = [8, 8], strides = [1, 1]} : vector<8x32xbf16> to vector<8x8xbf16>
    %50 = vector.extract_strided_slice %15 {offsets = [0, 16], sizes = [8, 8], strides = [1, 1]} : vector<8x32xbf16> to vector<8x8xbf16>
    %cst_15 = arith.constant dense<0.000000e+00> : vector<8x8xf32>
    %51 = tpu.matmul %48, %49, %cst_15 {dimension_numbers = #tpu.dot_dimension_numbers<[1], [1], [0], [0], [0, 0, 1, 0], [], []>} : vector<8x8xbf16>, vector<8x8xbf16>, vector<8x8xf32> -> vector<8x8xf32>
    %cst_16 = arith.constant dense<0xFF800000> : vector<8xf32>
    %52 = vector.multi_reduction <maximumf>, %51, %cst_16 [1] : vector<8x8xf32> to vector<8xf32>
    %53 = vector.shape_cast %52 : vector<8xf32> to vector<8x1xf32>
    %54 = vector.broadcast %53 : vector<8x1xf32> to vector<8x8xf32>
    %55 = arith.subf %51, %54 : vector<8x8xf32>
    %56 = math.exp %55 : vector<8x8xf32>
    %cst_17 = arith.constant dense<0.000000e+00> : vector<8xf32>
    %57 = vector.multi_reduction <add>, %56, %cst_17 [1] : vector<8x8xf32> to vector<8xf32>
    %58 = vector.shape_cast %57 : vector<8xf32> to vector<8x1xf32>
    %59 = arith.truncf %56 : vector<8x8xf32> to vector<8x8xbf16>
    %cst_18 = arith.constant dense<0.000000e+00> : vector<8x8xf32>
    %60 = tpu.matmul %59, %50, %cst_18 {dimension_numbers = #tpu.dot_dimension_numbers<[1], [0], [0], [1], [0, 0, 1, 1], [], []>} : vector<8x8xbf16>, vector<8x8xbf16>, vector<8x8xf32> -> vector<8x8xf32>
    %61 = tpu.reciprocal %58 {approx = true} : vector<8x1xf32> -> vector<8x1xf32>
    %62 = vector.broadcast %61 : vector<8x1xf32> to vector<8x8xf32>
    %63 = arith.mulf %60, %62 : vector<8x8xf32>
    %64 = vector.extract_strided_slice %13 {offsets = [0, 24], sizes = [8, 8], strides = [1, 1]} : vector<8x32xbf16> to vector<8x8xbf16>
    %65 = vector.extract_strided_slice %14 {offsets = [0, 24], sizes = [8, 8], strides = [1, 1]} : vector<8x32xbf16> to vector<8x8xbf16>
    %66 = vector.extract_strided_slice %15 {offsets = [0, 24], sizes = [8, 8], strides = [1, 1]} : vector<8x32xbf16> to vector<8x8xbf16>
    %cst_19 = arith.constant dense<0.000000e+00> : vector<8x8xf32>
    %67 = tpu.matmul %64, %65, %cst_19 {dimension_numbers = #tpu.dot_dimension_numbers<[1], [1], [0], [0], [0, 0, 1, 0], [], []>} : vector<8x8xbf16>, vector<8x8xbf16>, vector<8x8xf32> -> vector<8x8xf32>
    %cst_20 = arith.constant dense<0xFF800000> : vector<8xf32>
    %68 = vector.multi_reduction <maximumf>, %67, %cst_20 [1] : vector<8x8xf32> to vector<8xf32>
    %69 = vector.shape_cast %68 : vector<8xf32> to vector<8x1xf32>
    %70 = vector.broadcast %69 : vector<8x1xf32> to vector<8x8xf32>
    %71 = arith.subf %67, %70 : vector<8x8xf32>
    %72 = math.exp %71 : vector<8x8xf32>
    %cst_21 = arith.constant dense<0.000000e+00> : vector<8xf32>
    %73 = vector.multi_reduction <add>, %72, %cst_21 [1] : vector<8x8xf32> to vector<8xf32>
    %74 = vector.shape_cast %73 : vector<8xf32> to vector<8x1xf32>
    %75 = arith.truncf %72 : vector<8x8xf32> to vector<8x8xbf16>
    %cst_22 = arith.constant dense<0.000000e+00> : vector<8x8xf32>
    %76 = tpu.matmul %75, %66, %cst_22 {dimension_numbers = #tpu.dot_dimension_numbers<[1], [0], [0], [1], [0, 0, 1, 1], [], []>} : vector<8x8xbf16>, vector<8x8xbf16>, vector<8x8xf32> -> vector<8x8xf32>
    %77 = tpu.reciprocal %74 {approx = true} : vector<8x1xf32> -> vector<8x1xf32>
    %78 = vector.broadcast %77 : vector<8x1xf32> to vector<8x8xf32>
    %79 = arith.mulf %76, %78 : vector<8x8xf32>
    %80 = tpu.concatenate %31, %47, %63, %79 in 1 : vector<8x8xf32>, vector<8x8xf32>, vector<8x8xf32>, vector<8x8xf32> -> vector<8x32xf32>
    %81 = arith.truncf %80 : vector<8x32xf32> to vector<8x32xbf16>
    %c0_23 = arith.constant 0 : index
    %c0_24 = arith.constant 0 : index
    %82 = vector.load %arg4[%c0_23, %c0_24] : memref<32x32xbf16, #tpu.memory_space<vmem>>, vector<32x32xbf16>
    %cst_25 = arith.constant dense<0.000000e+00> : vector<8x32xf32>
    %83 = tpu.matmul %81, %82, %cst_25 {dimension_numbers = #tpu.dot_dimension_numbers<[1], [0], [0], [1], [0, 0, 1, 1], [], []>} : vector<8x32xbf16>, vector<32x32xbf16>, vector<8x32xf32> -> vector<8x32xf32>
    %c0_26 = arith.constant 0 : index
    %c0_27 = arith.constant 0 : index
    %84 = vector.load %arg5[%c0_26, %c0_27] : memref<1x32xf32, #tpu.memory_space<vmem>>, vector<1x32xf32>
    %85 = vector.broadcast %84 : vector<1x32xf32> to vector<8x32xf32>
    %86 = arith.addf %83, %85 : vector<8x32xf32>
    %c0_28 = arith.constant 0 : index
    %c0_29 = arith.constant 0 : index
    %c0_30 = arith.constant 0 : index
    %87 = vector.load %arg6[%c0_28, %c0_29, %c0_30] : memref<1x8x32xf32, #tpu.memory_space<vmem>>, vector<1x8x32xf32>
    %88 = vector.shape_cast %87 : vector<1x8x32xf32> to vector<8x32xf32>
    %89 = vector.shape_cast %86 : vector<8x32xf32> to vector<1x8x32xf32>
    tpu.vector_store %arg6[%c0_28, %c0_29, %c0_30], %89 {strides = array<i32>} : memref<1x8x32xf32, #tpu.memory_space<vmem>>, vector<1x8x32xf32>,
    return
  }
  func.func @transform_0(%arg0: i32) -> (i32, i32, i32) {
    %c0_i32 = arith.constant 0 : i32
    %c0_i32_0 = arith.constant 0 : i32
    %c0_i32_1 = arith.constant 0 : i32
    return %arg0, %c0_i32, %c0_i32_0 : i32, i32, i32
  }
  func.func @transform_1(%arg0: i32) -> (i32, i32) {
    %c0_i32 = arith.constant 0 : i32
    %c0_i32_0 = arith.constant 0 : i32
    %c0_i32_1 = arith.constant 0 : i32
    return %c0_i32, %c0_i32_0 : i32, i32
  }
  func.func @transform_2(%arg0: i32) -> (i32, i32) {
    %c0_i32 = arith.constant 0 : i32
    %c0_i32_0 = arith.constant 0 : i32
    %c0_i32_1 = arith.constant 0 : i32
    return %c0_i32, %c0_i32_0 : i32, i32
  }
  func.func @transform_3(%arg0: i32) -> (i32, i32) {
    %c0_i32 = arith.constant 0 : i32
    %c0_i32_0 = arith.constant 0 : i32
    %c0_i32_1 = arith.constant 0 : i32
    return %c0_i32, %c0_i32_0 : i32, i32
  }
  func.func @transform_4(%arg0: i32) -> (i32, i32) {
    %c0_i32 = arith.constant 0 : i32
    %c0_i32_0 = arith.constant 0 : i32
    %c0_i32_1 = arith.constant 0 : i32
    return %c0_i32, %c0_i32_0 : i32, i32
  }
  func.func @transform_5(%arg0: i32) -> (i32, i32, i32) {
    %c0_i32 = arith.constant 0 : i32
    %c0_i32_0 = arith.constant 0 : i32
    %c0_i32_1 = arith.constant 0 : i32
    return %arg0, %c0_i32, %c0_i32_0 : i32, i32, i32
  }
}

</mosaic_0001>

<bundles_post_ra>
// kernel: tpu_custom_call.1
= control target key start
LH: loop header
LB: loop body
LE: loop exit
PB: predicated region body
PF: predicated region fallthrough
CT: control target
= control target key end

     0   :  { %10 = vsyncpa [#allocation3], 0  ;;  %s1714_s0 = inlined_call_operand.hbm [shape: f32[2,8,32], index: 0, kind: input, shape index: {}]   ;;  %s1715_s1 = inlined_call_operand.hbm [shape: bf16[32,96], index: 1, kind: input, shape index: {}]   ;;  %s1716_s2 = inlined_call_operand.vmem [shape: f32[1,96], index: 2, kind: input, shape index: {}]   ;;  %s1717_s3 = inlined_call_operand.hbm [shape: bf16[32,32], index: 3, kind: input, shape index: {}]   ;;  %s1718_s4 = inlined_call_operand.vmem [shape: f32[1,32], index: 4, kind: input, shape index: {}]   ;;  %s1719_s5 = inlined_call_operand.hbm [shape: f32[2,8,32], index: 5, kind: output, shape index: {}]  }
   0x1   :  { %12 = vsyncpa [#allocation3 + $0x1], 0 }
   0x2   :  { %13 = vsyncpa [#allocation6], 0 }
   0x3   :  { %14 = vsyncpa [#allocation4], 0 }
   0x4   :  { %16 = vsyncpa [#allocation4 + $0x1], 0  ;;  %s1405_s18 = smov 0   ;;  %s1407_s19 = smov 0  }
   0x5   :  { %s1409_s20 = smov 0   ;;  %s1411_s21 = smov 0  }
   0x6 LB: > { %s1426_s22 = sadd.s32 4294967295, %s1351_s21   ;;  %s972_s23 = sadd.s32 4294967294, %s1351_s21   ;;  %s1351_s21 = sphi %s1411_s21, %s1739_s21   ;;  %s1347_s20 = sphi %s1409_s20, %s1738_s20   ;;  %s1343_s19 = sphi %s1407_s19, %s1737_s19   ;;  %s1339_s18 = sphi %s1405_s18, %s1736_s18  }
   0x7   : > { %p42_p0 = scmp.ne.s32.totalorder %s1343_s19, %s1339_s18  ;;  %p1720_p1 = scmp.eq.s32.totalorder %s1426_s22, 0 }
   0x8   : > { %p156_p3 = scmp.eq.s32.totalorder %s972_s23, 1  ;;  %p973_p5 = scmp.ge.s32.totalorder %s1351_s21, 1 }
   0x9   : > { %p1435_p4 = por %p1720_p1, %p42_p0  ;;  %p163_p7 = scmp.lt.s32.totalorder %s1351_s21, 3 }
   0xa   : > { %p1440_p6 = por %p156_p3, %p42_p0  ;;  %s1353_s27 = smov [#allocation5]  }
   0xb   : > { %s1723_s24 = scalar_select %p1435_p4, 1, 0 }
   0xc   : > { %s1724_s25 = scalar_select %p1440_p6, 1, 0 }
   0xd   : > { %p1445_p8 = pnand %p973_p5, %p163_p7  ;;  %s175_s28 = sshll.u32 %s1353_s27, 4  ;;  %s1449_s28 = int_to_ptr.vmem [resolvable:$true] %s175_s28 }
   0xe   : > { %s1354_s30 = smov [#allocation7]   ;;  %s1195_s9 = scalar_lea.hbm %s1715_s1, 256 }
   0xf   : > { %p1102_p9 = pneg %p1445_p8  ;;  %s191_s6 = sshll.u32 %s1354_s30, 4  ;;  %s1460_s6 = int_to_ptr.vmem [resolvable:$true] %s191_s6 }
  0x10   : > { %p1196_p12 = scmp.ne.s32.totalorder %s1715_s1, %s1195_s9  ;;  %p1202_p5 = scmp.lt.u32.totalorder %s1195_s9, %s1715_s1 }
  0x11   : > { %p1456_p11 = pnand %p1102_p9, %p1720_p1 }
  0x13   : > { %p1197_p13 = pneg %p1456_p11 }
  0x15   : > { %p1198_p0 = pnand %p1197_p13, %p1196_p12 }
  0x17   : > { %p1199_p3 = pneg %p1198_p0 }
  0x19   : > { %p1204_p7 = pnand %p1202_p5, %p1199_p3 }
  0x1b   : > { %1207 = shalt.err (!%p1204_p7)
}
  0x1c   : > { %s1208_s14 = scalar_lea.vmem %s1449_s28, 256  ;;  %p1216_p2 = scmp.lt.s32.totalorder %s1449_s28, %s1449_s28 }
  0x1d   : > { %p1209_p9 = scmp.ne.s32.totalorder %s1449_s28, %s1208_s14  ;;  %p1217_p12 = scmp.lt.s32.totalorder %s1208_s14, %s1208_s14 }
  0x1f   : > { %p1211_p10 = pnand %p1209_p9, %p1197_p13  ;;  %p1218_p0 = por %p1217_p12, %p1216_p2 }
  0x21   : > { %p1212_p1 = pneg %p1211_p10 }
  0x23   : > { %p1219_p6 = pnand %p1218_p0, %p1212_p1 }
  0x25   : > { %1222 = shalt.err (!%p1219_p6)
}
  0x26   : > { %s1355_s15 = smov 64   ;;  %s1356_s16 = smov 4  }
  0x27   : > { %1105 = dma.hbm_to_vmem [thread:$0]  (!%p1456_p11), %s1715_s1, 256, %s1449_s28, [#allocation6], %s1355_s15, %s1355_s15, %s1356_s16  }
  0x28   : > { %s1223_s7 = scalar_lea.hbm %s1717_s3, 256 }
  0x29   : > { %p1224_p2 = scmp.ne.s32.totalorder %s1717_s3, %s1223_s7  ;;  %p1230_p10 = scmp.lt.u32.totalorder %s1223_s7, %s1717_s3 }
  0x2b   : > { %p1226_p1 = pnand %p1224_p2, %p1197_p13 }
  0x2d   : > { %p1227_p6 = pneg %p1226_p1 }
  0x2f   : > { %p1232_p3 = pnand %p1230_p10, %p1227_p6 }
  0x31   : > { %1235 = shalt.err (!%p1232_p3)
}
  0x32   : > { %s1236_s28 = scalar_lea.vmem %s1460_s6, 256  ;;  %p1244_p12 = scmp.lt.s32.totalorder %s1460_s6, %s1460_s6 }
  0x33   : > { %p1237_p5 = scmp.ne.s32.totalorder %s1460_s6, %s1236_s28  ;;  %p1245_p0 = scmp.lt.s32.totalorder %s1236_s28, %s1236_s28 }
  0x35   : > { %p1239_p7 = pnand %p1237_p5, %p1197_p13  ;;  %p1246_p2 = por %p1245_p0, %p1244_p12 }
  0x37   : > { %p1240_p9 = pneg %p1239_p7 }
  0x39   : > { %p1247_p1 = pnand %p1246_p2, %p1240_p9 }
  0x3b   : > { %1250 = shalt.err (!%p1247_p1)
}
  0x3c   : > { %1108 = dma.hbm_to_vmem [thread:$0]  (!%p1456_p11), %s1717_s3, 256, %s1460_s6, [#allocation6], %s1355_s15, %s1355_s15, %s1356_s16  }
  0x3d   : > { %s1515_s14 = sadd.s32 1, %s1351_s21   ;;  %s29_s29 = sadd.s32 1, %s1347_s20 }
  0x3e   : > { %s26_s17 = ssub.s32 %s1351_s21, %s1515_s14  ;;  %p36_p13 = scmp.ne.s32.totalorder %s1347_s20, %s1343_s19 }
  0x3f   : > { %p27_p6 = scmp.eq.s32.totalorder %s26_s17, 0  ;;  %p37_p10 = scmp.eq.s32.totalorder %s1351_s21, 0 }
  0x40   : > { %p1727_p3 = scmp.eq.s32.totalorder %s1426_s22, 1  ;;  %p1119_p7 = scmp.lt.s32.totalorder %s1351_s21, 2 }
  0x41   : > { %s1531_s27 = scalar_select %p27_p6, %s1347_s20, %s29_s29  }
  0x42   : > { %p1525_p5 = por %p1727_p3, %p36_p13  ;;  %p38_p9 = por %p37_p10, %p36_p13 }
  0x43   : > { %s208_s30 = sand.u32 1, %s1347_s20   ;;  %s978_s6 = sshll.u32 %s1351_s21, 7 }
  0x44   : > { %s1728_s23 = scalar_select %p1525_p5, 1, 0 }
  0x45   : > { %s977_s7 = sshll.u32 %s208_s30, 3  ;;  %s1538_s8 = scalar_lea.hbm %s1714_s0, %s978_s6 }
  0x46   : > { %s212_s9 = scalar_lea.vmem [#allocation2], %s977_s7  ;;  %p1542_p11 = pnand %p1119_p7, %p38_p9 }
  0x47   : > { %s219_s10 = sshll.u32 %s212_s9, 4  ;;  %s209_s28 = scalar_lea.sflag [#allocation3], %s208_s30  ;;  %s1540_s10 = int_to_ptr.vmem [resolvable:$true] %s219_s10 }
  0x48   : > { %s1251_s12 = scalar_lea.hbm %s1538_s8, 128  ;;  %p1253_p0 = pneg %p1542_p11 }
  0x49   : > { %p1252_p12 = scmp.ne.s32.totalorder %s1538_s8, %s1251_s12  ;;  %s1256_s17 = scalar_lea.hbm %s1714_s0, 256 }
  0x4a   : > { %p1257_p13 = scmp.lt.u32.totalorder %s1538_s8, %s1714_s0  ;;  %p1258_p6 = scmp.lt.u32.totalorder %s1256_s17, %s1251_s12 }
  0x4b   : > { %p1254_p2 = pnand %p1253_p0, %p1252_p12  ;;  %p1260_p3 = scmp.lt.u32.totalorder %s1251_s12, %s1538_s8 }
  0x4c   : > { %p1259_p10 = por %p1258_p6, %p1257_p13 }
  0x4d   : > { %p1255_p1 = pneg %p1254_p2 }
  0x4e   : > { %p1261_p7 = por %p1260_p3, %p1259_p10 }
  0x50   : > { %p1262_p9 = pnand %p1261_p7, %p1255_p1 }
  0x52   : > { %1265 = shalt.err (!%p1262_p9)
}
  0x53   : > { %s1266_s30 = scalar_lea.vmem %s1540_s10, 128  ;;  %s1357_s15 = smov [#allocation2]  }
  0x54   : > { %p1267_p12 = scmp.ne.s32.totalorder %s1540_s10, %s1266_s30  ;;  %s1271_s16 = sshll.u32 %s1357_s15, 4  ;;  %s1272_s16 = int_to_ptr.vmem [resolvable:$false] %s1271_s16 }
  0x55   : > { %s1273_s9 = scalar_lea.vmem %s1272_s16, 256  ;;  %p1274_p4 = scmp.lt.s32.totalorder %s1540_s10, %s1272_s16 }
  0x56   : > { %p1269_p2 = pnand %p1267_p12, %p1253_p0  ;;  %p1275_p13 = scmp.lt.s32.totalorder %s1273_s9, %s1266_s30 }
  0x58   : > { %p1270_p5 = pneg %p1269_p2  ;;  %p1276_p6 = por %p1275_p13, %p1274_p4 }
  0x5a   : > { %p1277_p10 = pnand %p1276_p6, %p1270_p5 }
  0x5c   : > { %1280 = shalt.err (!%p1277_p10)
}
  0x5d   : > { %1112 = dma.hbm_to_vmem [thread:$0]  (!%p1542_p11), %s1538_s8, 128, %s1540_s10, %s209_s28  }
  0x5e   : > { %228 = sbr.rel (%p1445_p8) target bundleno = 1439 (0x59f), region = 40  ;;  %s1574_s12 = sand.u32 (!%p1445_p8), 1, %s1343_s19  }
  0x5f   : > { %s980_s13 = sshll.u32 (!%p1445_p8), %s1574_s12, 3  ;;  %s231_s29 = scalar_lea.sflag (!%p1445_p8), [#allocation3], %s1574_s12 }
  0x60   : > { %s234_s17 = scalar_lea.vmem (!%p1445_p8), [#allocation2], %s980_s13  ;;  %p1730_p4 = scmp.ne.s32.totalorder (!%p1445_p8), %s1723_s24, 0 }
  0x65   : > { %1326 = dma.done.wait (%p1730_p4), %s231_s29, 128  }
  0x66   : > { %1328 = vsyncadd (%p1730_p4), %s231_s29, 4294967168  ;;  %p1731_p5 = scmp.eq.s32.totalorder %s1426_s22, 0 }
  0x68   : > { %1330 = dma.done.wait (%p1731_p5), [#allocation6], 512   ;;  %p1732_p8 = pmov %p1731_p5 }
  0x69   : > { %v1358_v0 = vmov 0.0   ;;  %vm1359_vm0 = vmmov 0   ;;  %v1175_v1 = vld [vmem:[#allocation5] sm:$0xff]   ;;  %v1176_v2 = vld [vmem:[#allocation5 + $0x8] sm:$0xff]   ;;  %v270_v3 = vld [vmem:[%s234_s17] sm:$0xff]  ;;  %vm295_vm1 = vcmask 261120  }
  0x6a   : > { %1332 = vsyncadd (%p1732_p8), [#allocation6], 4294966784  ;;  %1026 = vmatprep.subr.bf16.mxu0 %v1358_v0  ;;  %1030 = vmatprep.mubr.msk.bf16.mxu0 %vm1359_vm0, %v1358_v0  ;;  %v271_v4 = vpack.c.bf16 %v270_v3, %v270_v3  ;;  %v984_v5 = vld [vmem:[%s1716_s2] ss:$0 sm:$0xff]  ;;  %s1360_s8 = smov 96   ;;  %s1361_s10 = smov 120  }
  0x6b   : > { %1034 = vmatprep.subr.bf16.mxu1 %v1358_v0  ;;  %1036 = vmatprep.mubr.msk.bf16.mxu1 %vm1359_vm0, %v1358_v0  ;;  %s1362_s11 = smov 88   ;;  %s1363_s28 = smov 80   ;;  %vm345_vm2 = vcmask 64512   ;;  %vm407_vm3 = vcmask 1043456   ;;  %vm797_vm4 = vcmask 130048   ;;  %vm799_vm5 = vcmask 195584  }
  0x6c   : > { %1027 = vmatpush3.bf16.msra.mxu0 %v1175_v1  ;;  %s1364_s7 = smov 112   ;;  %s1365_s6 = smov 72  }
  0x6d   : > { %1028 = vmatprep.subr.bf16.mxu0 %v1358_v0  ;;  %s1366_s30 = smov 104   ;;  %s1367_s15 = smov 56  }
  0x6e   : > { %s1368_s16 = smov 64   ;;  %s1369_s9 = smov 40  }
  0x6f   : > { %s1370_s29 = smov 48   ;;  %s1371_s17 = smov 8  }
  0x70   : > { %1029 = vmatpush3.bf16.msra.mxu0 %v1176_v2  ;;  %s1372_s24 = smov 16   ;;  %s1373_s26 = smov 24  }
  0x71   : > { %1040 = vmatprep.subr.bf16.mxu0 %v1358_v0  ;;  %p1733_p0 = scmp.ne.s32.totalorder %s1728_s23, 0 }
  0x73   : > { %1031 = vmatmul.mubr.msk.bf16.vlgmr.msra.gmra.mrb[0].mxu0 %vm295_vm1, %v271_v4 }
  0x74   : > { %1042 = vmatprep.mubr.msk.bf16.mxu0 %vm1359_vm0, %v1358_v0 }
 0x146   : > { %v333_v6 = vpop.f32.mrb[0].mxu0 }
 0x147   : > { %v334_v7 = vadd.f32 %v984_v5, %v333_v6  ;;  %v1032_v8 = vpop.f32.mrb[1].mxu0 }
 0x148   : > { %v336_v9 = vpop.f32.mrb[2].mxu0 }
 0x149   : > { %v339_v10 = vmul.f32 0.35355338, %v334_v7  ;;  %v1602_v11 = vpack.c.bf16 %v334_v7, %v334_v7  ;;  %v1033_v12 = vpop.f32.mrb[3].mxu0 }
 0x14b   : > { %v340_v13 = vpack.c.bf16 %v339_v10, %v339_v10  ;;  %343 = vrot.lane.b32.xlu0 %v1602_v11, %s1360_s8 }
 0x14d   : > { %454 = vrot.lane.b32.xlu1 %v340_v13, %s1361_s10 }
 0x14f   : > { %456 = vrot.lane.b32.xlu0 %v1602_v11, %s1362_s11  ;;  %s1001_s11 = sshll.u32 %s1426_s22, 7  ;;  %s870_s22 = scalar_lea.sflag [#allocation4], %s1574_s12 }
 0x151   : > { %566 = vrot.lane.b32.xlu1 %v1602_v11, %s1363_s28  ;;  %s268_s28 = scalar_lea.vmem [#allocation8], %s980_s13 }
 0x153   : > { %564 = vrot.lane.b32.xlu0 %v340_v13, %s1364_s7  ;;  %s883_s7 = sshll.u32 %s268_s28, 4  ;;  %s1671_s7 = int_to_ptr.vmem [resolvable:$true] %s883_s7 }
 0x154   : > { %s1281_s13 = scalar_lea.vmem %s1671_s7, 128 }
 0x155   : > { %676 = vrot.lane.b32.xlu1 %v1602_v11, %s1365_s6  ;;  %p1282_p11 = scmp.ne.s32.totalorder %s1671_s7, %s1281_s13 }
 0x157   : > { %674 = vrot.lane.b32.xlu0 %v340_v13, %s1366_s30  ;;  %p1283_p1 = pnand %p1282_p11, %p1733_p0 }
 0x159   : > { %p1284_p3 = pneg %p1283_p1 }
 0x1bd   : > { %v344_v14 = vpop.permute.xlu0 %343 }
 0x1be   : > { %v350_v15 = vsel %vm345_vm2, %v344_v14, 0 }
 0x1bf   : > { %1035 = vmatpush3.bf16.xpose.msra.mxu1 %v350_v15  ;;  %v455_v17 = vpop.permute.xlu1 %454 }
 0x1c0   : > { %1046 = vmatprep.subr.bf16.mxu1 %v1358_v0 }
 0x1c1   : > { %v457_v16 = vpop.permute.xlu0 %456 }
 0x1c2   : > { %v462_v18 = vsel %vm345_vm2, %v457_v16, 0 }
 0x1c3   : > { %v567_v19 = vpop.permute.xlu1 %566 }
 0x1c4   : > { %v572_v20 = vsel %vm345_vm2, %v567_v19, 0 }
 0x1c5   : > { %v565_v22 = vpop.permute.xlu0 %564 }
 0x1c6   : > { %1037 = vmatmul.mubr.msk.bf16.vlgmr.msra.gmra.mrb[0].mxu1 %vm345_vm2, %v340_v13 }
 0x1c7   : > { %1047 = vmatpush3.bf16.xpose.msra.mxu1 %v462_v18  ;;  %1048 = vmatprep.mubr.msk.bf16.mxu1 %vm1359_vm0, %v1358_v0  ;;  %v677_v21 = vpop.permute.xlu1 %676 }
 0x1c8   : > { %1058 = vmatprep.subr.bf16.mxu1 %v1358_v0  ;;  %v682_v23 = vsel %vm345_vm2, %v677_v21, 0 }
 0x1c9   : > { %v675_v24 = vpop.permute.xlu0 %674 }
 0x1ce   : > { %1049 = vmatmul.mubr.msk.bf16.vlgmr.msra.gmra.mrb[4].mxu1 %vm345_vm2, %v455_v17 }
 0x1cf   : > { %1059 = vmatpush3.bf16.xpose.msra.mxu1 %v572_v20  ;;  %1060 = vmatprep.mubr.msk.bf16.mxu1 %vm1359_vm0, %v1358_v0 }
 0x1d0   : > { %1070 = vmatprep.subr.bf16.mxu1 %v1358_v0 }
 0x1d6   : > { %1061 = vmatmul.mubr.msk.bf16.vlgmr.msra.gmra.mrb[8].mxu1 %vm345_vm2, %v565_v22 }
 0x1d7   : > { %1071 = vmatpush3.bf16.xpose.msra.mxu1 %v682_v23  ;;  %1072 = vmatprep.mubr.msk.bf16.mxu1 %vm1359_vm0, %v1358_v0 }
 0x1d8   : > { %1082 = vmatprep.subr.bf16.mxu1 %v1358_v0 }
 0x1de   : > { %1073 = vmatmul.mubr.msk.bf16.vlgmr.msra.gmra.mrb[12].mxu1 %vm345_vm2, %v675_v24 }
 0x1df   : > { %1086 = vmatprep.mubr.msk.bf16.mxu1 %vm1359_vm0, %v1358_v0 }
 0x299   : > { %v386_v25 = vpop.f32.mrb[0].mxu1 }
 0x29a   : > { %v1038_v26 = vpop.f32.mrb[1].mxu1  ;;  %v392_v27 = vsel %vm345_vm2, %v386_v25, -inf }
 0x29b   : > { %393 = vmax.xlane.f32.xlu1 %v392_v27  ;;  %v389_v28 = vpop.f32.mrb[2].mxu1  ;;  %v1177_v26 = vld [vmem:[#allocation7] sm:$0xff]  }
 0x29c   : > { %v1039_v29 = vpop.f32.mrb[3].mxu1  ;;  %1083 = vmatpush3.bf16.msra.mxu1 %v1177_v26  ;;  %v1178_v28 = vld [vmem:[#allocation7 + $0x8] sm:$0xff]  }
 0x29d   : > { %1084 = vmatprep.subr.bf16.mxu1 %v1358_v0 }
 0x2a0   : > { %1085 = vmatpush3.bf16.msra.mxu1 %v1178_v28 }
 0x2a1   : > { %v498_v30 = vpop.f32.mrb[4].mxu1 }
 0x2a2   : > { %v1050_v31 = vpop.f32.mrb[5].mxu1  ;;  %v504_v32 = vsel %vm345_vm2, %v498_v30, -inf }
 0x2a3   : > { %505 = vmax.xlane.f32.xlu0 %v504_v32  ;;  %v501_v33 = vpop.f32.mrb[6].mxu1 }
 0x2a4   : > { %v1051_v34 = vpop.f32.mrb[7].mxu1 }
 0x2a9   : > { %v608_v35 = vpop.f32.mrb[8].mxu1 }
 0x2aa   : > { %v1062_v36 = vpop.f32.mrb[9].mxu1  ;;  %v614_v37 = vsel %vm345_vm2, %v608_v35, -inf }
 0x2ab   : > { %615 = vmax.xlane.f32.xlu0 %v614_v37  ;;  %v611_v38 = vpop.f32.mrb[10].mxu1 }
 0x2ac   : > { %514 = vrot.lane.b32.xlu1 %v1602_v11, %s1367_s15  ;;  %v1063_v39 = vpop.f32.mrb[11].mxu1  ;;  %s1669_s15 = scalar_lea.hbm %s1719_s5, %s1001_s11 }
 0x2b1   : > { %v718_v40 = vpop.f32.mrb[12].mxu1 }
 0x2b2   : > { %v1074_v41 = vpop.f32.mrb[13].mxu1  ;;  %v724_v44 = vsel %vm345_vm2, %v718_v40, -inf }
 0x2b3   : > { %v721_v42 = vpop.f32.mrb[14].mxu1 }
 0x2b4   : > { %v1075_v43 = vpop.f32.mrb[15].mxu1 }
 0x2c1   : > { %402 = vrot.lane.b32.xlu0 %v1602_v11, %s1368_s16  ;;  %s1374_s16 = smov [#allocation8]  }
 0x2c5   : > { %734 = vrot.lane.b32.xlu0 %v1602_v11, %s1369_s9  ;;  %s1285_s9 = sshll.u32 %s1374_s16, 4  ;;  %s1286_s9 = int_to_ptr.vmem [resolvable:$false] %s1285_s9 }
 0x2c6   : > { %p1288_p7 = scmp.lt.s32.totalorder %s1671_s7, %s1286_s9 }
 0x2d0   : > { %725 = vmax.xlane.f32.xlu1 %v724_v44 }
 0x2e1   : > { %624 = vrot.lane.b32.xlu1 %v1602_v11, %s1370_s29  ;;  %s1287_s29 = scalar_lea.vmem %s1286_s9, 256 }
 0x2e2   : > { %p1289_p9 = scmp.lt.s32.totalorder %s1287_s29, %s1281_s13 }
 0x2e4   : > { %p1290_p12 = por %p1289_p9, %p1288_p7 }
 0x2e6   : > { %p1291_p2 = pnand %p1290_p12, %p1284_p3 }
 0x328   : > { %v394_v45 = vpop.xlane.xlu1 %393 }
 0x329   : > { %v395_v46 = vsub.f32 %v386_v25, %v394_v45 }
 0x32b   : > { %v396_v47 = vmul.f32 1.442695, %v395_v46 }
 0x32c   : > { %v515_v57 = vpop.permute.xlu1 %514 }
 0x32d   : > { %1179 = vpow2.f32 %v396_v47  ;;  %v520_v61 = vsel %vm407_vm3, %v515_v57, 0 }
 0x330   : > { %v506_v48 = vpop.xlane.xlu0 %505 }
 0x331   : > { %v507_v49 = vsub.f32 %v498_v30, %v506_v48 }
 0x333   : > { %v508_v50 = vmul.f32 1.442695, %v507_v49 }
 0x335   : > { %1181 = vpow2.f32 %v508_v50  ;;  %v996_v50 = vld [vmem:[%s1718_s4] ss:$0 sm:$0xff] }
 0x337   : > { %v1180_v54 = vpop.eup %1179 }
 0x338   : > { %v616_v51 = vpop.xlane.xlu0 %615  ;;  %v401_v59 = vpack.c.bf16 %v1180_v54, %v1180_v54  ;;  %v398_v62 = vsel %vm345_vm2, %v1180_v54, 0.0 }
 0x339   : > { %v617_v52 = vsub.f32 %v608_v35, %v616_v51 }
 0x33b   : > { %v618_v53 = vmul.f32 1.442695, %v617_v52 }
 0x33c   : > { %v403_v55 = vpop.permute.xlu0 %402 }
 0x33d   : > { %1183 = vpow2.f32 %v618_v53  ;;  %v409_v56 = vsel %vm407_vm3, %v403_v55, 0 }
 0x33e   : > { %1041 = vmatpush3.bf16.msra.mxu0 %v409_v56 }
 0x33f   : > { %v1182_v58 = vpop.eup %1181  ;;  %1052 = vmatprep.subr.bf16.mxu0 %v1358_v0 }
 0x340   : > { %v510_v60 = vsel %vm345_vm2, %v1182_v58, 0.0  ;;  %v513_v1 = vpack.c.bf16 %v1182_v58, %v1182_v58  ;;  %v735_v8 = vpop.permute.xlu0 %734 }
 0x341   : > { %1043 = vmatmul.mubr.msk.bf16.vlgmr.msra.gmra.mrb[4].mxu0 %vm345_vm2, %v401_v59  ;;  %511 = vadd.xlane.f32.xlu1 %v510_v60  ;;  %v740_v10 = vsel %vm407_vm3, %v735_v8, 0 }
 0x342   : > { %1053 = vmatpush3.bf16.msra.mxu0 %v520_v61  ;;  %1054 = vmatprep.mubr.msk.bf16.mxu0 %vm1359_vm0, %v1358_v0 }
 0x343   : > { %1064 = vmatprep.subr.bf16.mxu0 %v1358_v0 }
 0x345   : > { %399 = vadd.xlane.f32.xlu1 %v398_v62 }
 0x347   : > { %v1184_v63 = vpop.eup %1183 }
 0x348   : > { %v620_v2 = vsel %vm345_vm2, %v1184_v63, 0.0  ;;  %v623_v9 = vpack.c.bf16 %v1184_v63, %v1184_v63 }
 0x349   : > { %621 = vadd.xlane.f32.xlu0 %v620_v2  ;;  %1055 = vmatmul.mubr.msk.bf16.vlgmr.msra.gmra.mrb[8].mxu0 %vm345_vm2, %v513_v1 }
 0x34a   : > { %1066 = vmatprep.mubr.msk.bf16.mxu0 %vm1359_vm0, %v1358_v0 }
 0x35d   : > { %v726_v3 = vpop.xlane.xlu1 %725 }
 0x35e   : > { %v727_v4 = vsub.f32 %v718_v40, %v726_v3 }
 0x360   : > { %v728_v5 = vmul.f32 1.442695, %v727_v4 }
 0x361   : > { %v625_v6 = vpop.permute.xlu1 %624 }
 0x362   : > { %1185 = vpow2.f32 %v728_v5  ;;  %v630_v7 = vsel %vm407_vm3, %v625_v6, 0 }
 0x363   : > { %1065 = vmatpush3.bf16.msra.mxu0 %v630_v7 }
 0x364   : > { %1076 = vmatprep.subr.bf16.mxu0 %v1358_v0 }
 0x366   : > { %1067 = vmatmul.mubr.msk.bf16.vlgmr.msra.gmra.mrb[12].mxu0 %vm345_vm2, %v623_v9 }
 0x367   : > { %1077 = vmatpush3.bf16.msra.mxu0 %v740_v10  ;;  %1078 = vmatprep.mubr.msk.bf16.mxu0 %vm1359_vm0, %v1358_v0 }
 0x36c   : > { %v1186_v11 = vpop.eup %1185 }
 0x36d   : > { %v730_v12 = vsel %vm345_vm2, %v1186_v11, 0.0  ;;  %v733_v13 = vpack.c.bf16 %v1186_v11, %v1186_v11 }
 0x36e   : > { %731 = vadd.xlane.f32.xlu0 %v730_v12 }
 0x36f   : > { %1079 = vmatmul.mubr.msk.bf16.vlgmr.msra.gmra.mrb[16].mxu0 %vm345_vm2, %v733_v13 }
 0x3ce   : > { %v512_v14 = vpop.xlane.xlu1 %511 }
 0x3cf   : > { %1187 = vrcp.f32 %v512_v14 }
 0x3d2   : > { %v400_v40 = vpop.xlane.xlu1 %399 }
 0x3d6   : > { %v622_v25 = vpop.xlane.xlu0 %621 }
 0x3d7   : > { %1189 = vrcp.f32 %v622_v25 }
 0x3d9   : > { %v1188_v19 = vpop.eup %1187 }
 0x3e1   : > { %v1190_v29 = vpop.eup %1189 }
 0x3fb   : > { %v732_v27 = vpop.xlane.xlu0 %731 }
 0x3fc   : > { %1191 = vrcp.f32 %v732_v27 }
 0x3fd   : > { %1193 = vrcp.f32 %v400_v40 }
 0x406   : > { %v1192_v35 = vpop.eup %1191 }
 0x407   : > { %v1194_v41 = vpop.eup %1193 }
 0x414   : > { %v445_v15 = vpop.f32.mrb[4].mxu0 }
 0x415   : > { %v1044_v16 = vpop.f32.mrb[5].mxu0  ;;  %v452_v44 = vmul.f32 %v1194_v41, %v445_v15 }
 0x416   : > { %v448_v17 = vpop.f32.mrb[6].mxu0 }
 0x417   : > { %v1045_v18 = vpop.f32.mrb[7].mxu0 }
 0x41c   : > { %v556_v20 = vpop.f32.mrb[8].mxu0 }
 0x41d   : > { %v563_v21 = vmul.f32 %v1188_v19, %v556_v20  ;;  %v1056_v22 = vpop.f32.mrb[9].mxu0 }
 0x41e   : > { %v559_v23 = vpop.f32.mrb[10].mxu0 }
 0x41f   : > { %785 = vrot.lane.b32.xlu0 %v563_v21, %s1371_s17  ;;  %v1057_v24 = vpop.f32.mrb[11].mxu0 }
 0x439   : > { %v666_v30 = vpop.f32.mrb[12].mxu0 }
 0x43a   : > { %v673_v31 = vmul.f32 %v1190_v29, %v666_v30  ;;  %v1068_v32 = vpop.f32.mrb[13].mxu0 }
 0x43b   : > { %v669_v33 = vpop.f32.mrb[14].mxu0 }
 0x43c   : > { %789 = vrot.lane.b32.xlu1 %v673_v31, %s1372_s24  ;;  %v1069_v34 = vpop.f32.mrb[15].mxu0 }
 0x442   : > { %v776_v36 = vpop.f32.mrb[16].mxu0 }
 0x443   : > { %v783_v37 = vmul.f32 %v1192_v35, %v776_v36  ;;  %v1080_v38 = vpop.f32.mrb[17].mxu0 }
 0x444   : > { %v779_v39 = vpop.f32.mrb[18].mxu0 }
 0x445   : > { %793 = vrot.lane.b32.xlu1 %v783_v37, %s1373_s26  ;;  %v1081_v0 = vpop.f32.mrb[19].mxu0 }
 0x491   : > { %v786_v42 = vpop.permute.xlu0 %785 }
 0x492   : > { %v796_v45 = vsel %vm345_vm2, %v452_v44, %v786_v42 }
 0x4ae   : > { %v790_v43 = vpop.permute.xlu1 %789 }
 0x4af   : > { %v798_v46 = vsel %vm797_vm4, %v796_v45, %v790_v43 }
 0x4b7   : > { %v794_v47 = vpop.permute.xlu1 %793 }
 0x4b8   : > { %v800_v48 = vsel %vm799_vm5, %v798_v46, %v794_v47 }
 0x4b9   : > { %v801_v49 = vpack.c.bf16 %v800_v48, %v800_v48 }
 0x4bb   : > { %1087 = vmatmul.mubr.msk.bf16.vlgmr.msra.gmra.mrb[16].mxu1 %vm295_vm1, %v801_v49 }
 0x58e   : > { %v862_v51 = vpop.f32.mrb[16].mxu1 }
 0x58f   : > { %v863_v52 = vadd.f32 %v996_v50, %v862_v51  ;;  %v1088_v53 = vpop.f32.mrb[17].mxu1 }
 0x590   : > { %v865_v54 = vpop.f32.mrb[18].mxu1 }
 0x591   : > { %v1089_v55 = vpop.f32.mrb[19].mxu1  ;;  %868 = vst.msk [vmem:[%s268_s28] sm:$0xff] %vm295_vm1, %v863_v52 }
 0x592   : > { %1294 = shalt.err (!%p1291_p2)
}
 0x593   : > { %s1295_s12 = scalar_lea.hbm %s1669_s15, 128  ;;  %s1299_s26 = scalar_lea.hbm %s1719_s5, 256 }
 0x594   : > { %p1296_p13 = scmp.ne.s32.totalorder %s1669_s15, %s1295_s12  ;;  %p1300_p4 = scmp.lt.u32.totalorder %s1669_s15, %s1719_s5 }
 0x595   : > { %p1301_p5 = scmp.lt.u32.totalorder %s1299_s26, %s1295_s12  ;;  %p1303_p11 = scmp.lt.u32.totalorder %s1295_s12, %s1669_s15 }
 0x596   : > { %p1297_p6 = pnand %p1296_p13, %p1733_p0 }
 0x597   : > { %p1302_p8 = por %p1301_p5, %p1300_p4 }
 0x598   : > { %p1298_p10 = pneg %p1297_p6 }
 0x599   : > { %p1304_p1 = por %p1303_p11, %p1302_p8 }
 0x59b   : > { %p1305_p3 = pnand %p1304_p1, %p1298_p10 }
 0x59d   : > { %1308 = shalt.err (!%p1305_p3)
}
 0x59e   : > { %1100 = dma.vmem_to_hbm [thread:$0]  (%p1733_p0), %s1671_s7, 128, %s1669_s15, %s870_s22  }
 0x59f PF: > { %s895_s11 = sand.u32 1, %s1339_s18   ;;  %p1734_p7 = scmp.ne.s32.totalorder %s1724_s25, 0 }
 0x5a0   : > { %p1735_p9 = scmp.ge.s32.totalorder %s1351_s21, 2  ;;  %s896_s28 = scalar_lea.sflag [#allocation4], %s895_s11 }
 0x5a2   : > { %p1114_p12 = pnand %p1735_p9, %p1734_p7 }
 0x5a4   : > { %1334 = dma.done.wait (!%p1114_p12), %s896_s28, 128  }
 0x5a5   : > { %1336 = vsyncadd (!%p1114_p12), %s896_s28, 4294967168  ;;  %p19_p2 = scmp.ge.s32.totalorder %s1515_s14, 4   ;;  %s1736_s18 = smov %s1343_s19 }
 0x5a6   : > { %s1737_s19 = smov %s1347_s20  ;;  %s1738_s20 = smov %s1531_s27 }
 0x5a7   : > { %s1739_s21 = smov %s1515_s14  ;;  %21 = sbr.rel (!%p19_p2) target bundleno = 6 (0x6), region = 93 }
 0x5ae   :  { %901 = vsyncpa [#allocation3], 1 }
 0x5af   :  { %903 = vsyncpa [#allocation3 + $0x1], 1 }
 0x5b0   :  { %904 = vsyncpa [#allocation6], 1 }
 0x5b1   :  { %905 = vsyncpa [#allocation4], 1 }
 0x5b2   :  { %907 = vsyncpa [#allocation4 + $0x1], 1 }

</bundles_post_ra>
